<compile_context>
chip_gen: v7x
topology: tpu7x:2x2x1
jax: 0.10.0
libtpu: 0.0.40
codegen_flags: <defaults>
</compile_context>

<pallas_src>
import jax
import jax.numpy as jnp
from jax.experimental import pallas as pl
from jax.experimental.pallas import tpu as pltpu

EMBED_DIM = 300
HID = 10
PACK_W = 128            # lane-dense packed output width; rating lives in column 0


def _round_up(n, m):
    return ((n + m - 1) // m) * m


def _cdiv(a, b):
    return (a + b - 1) // b


def mlp_kernel(x_ref, w0_ref, b0_ref, w1_ref, b1_ref, w2_ref, b2_ref, out_ref):
    """One batch tile.

    x_ref  : (TB, L*300) bf16 -- each row is the L token embeddings concatenated.
    w0_ref : (L*300, 10) bf16 -- doc0 weight tiled L times, so
             dot(x_concat, w0_rep) == (sum_l x_l) @ w0: the avg-pool is fused
             into one bf16 MXU matmul (f32 accumulate), no upcast/reshape.
    out_ref: (TB, 128) f32 -- rating broadcast across lanes; wrapper reads col 0.
    """
    L = x_ref.shape[1] // EMBED_DIM

    # avg_pool over the sequence + doc0: one bf16 MXU matmul, fold 1/L after.
    h = jnp.dot(x_ref[...], w0_ref[...], preferred_element_type=jnp.float32)   # (TB, 10)
    h0 = jnp.maximum(h * (1.0 / L) + b0_ref[...], 0.0)

    # doc1: Linear(10, 10) + ReLU
    x1 = jnp.maximum(
        jnp.dot(h0, w1_ref[...], preferred_element_type=jnp.float32) + b1_ref[...],
        0.0)

    # final: Linear(10, 1)
    rating = jnp.dot(x1, w2_ref[...], preferred_element_type=jnp.float32) + b2_ref[...]

    # Single full-width, lane-dense store (no masked sub-128-lane partial stores).
    out_ref[...] = jnp.broadcast_to(rating, out_ref.shape)


def init_params(key):
    """Deterministic init mimicking nn.Linear's U(-1/sqrt(fan_in), 1/sqrt(fan_in))."""
    def linear(k, fan_in, fan_out):
        k1, k2 = jax.random.split(k)
        bound = 1.0 / float(fan_in) ** 0.5
        w = jax.random.uniform(k1, (fan_in, fan_out), jnp.float32, -bound, bound)
        b = jax.random.uniform(k2, (1, fan_out), jnp.float32, -bound, bound)
        return w, b

    k0, k1, k2 = jax.random.split(key, 3)
    w0, b0 = linear(k0, EMBED_DIM, HID)
    w1, b1 = linear(k1, HID, HID)
    w2, b2 = linear(k2, HID, 1)
    return (w0, b0, w1, b1, w2, b2)


def _vmem_capacity_bytes():
    """Physical VMEM per core; conservative 64 MiB fallback (v7x-sized)."""
    try:
        info = pltpu.get_tpu_info()
        for name in ("vmem_capacity_bytes", "vmem_size_bytes", "vmem_bytes"):
            v = getattr(info, name, None)
            if v:
                return int(v)
    except Exception:
        pass
    return 64 << 20


def _vmem_need_bytes(tb, L):
    """Padded-layout VMEM accounting for one grid generation."""
    x_tile = tb * _round_up(L * EMBED_DIM, 128) * 2          # bf16, lane-padded
    out_tile = tb * PACK_W * 4
    w_res = (_round_up(L * EMBED_DIM, 16) * 128 * 2          # w0 tiled, bf16
             + 2 * 16 * 128 * 4                              # w1, w2 (sublane-padded f32)
             + 3 * 8 * 128 * 4)                              # b0, b1, b2
    inter = 6 * tb * PACK_W * 4                              # small f32 temps (h, h0, x1, slab)
    # x/out tiles and (constant) weight blocks are double-buffered by Pallas.
    return 2 * (x_tile + out_tile) + 2 * w_res + inter + (2 << 20)


def _pick_tb(B, L, vmem_cap):
    """Batch tile: target ~8 MiB padded x tiles on 64 MiB-VMEM parts (v7x),
    ~14 MiB on 128 MiB parts (v5e/v6e) -- big enough to amortize the ~0.35 us
    per-grid-step overhead and keep the HBM stream saturated."""
    target = (8 << 20) if vmem_cap <= (64 << 20) else (14 << 20)
    row_bytes = _round_up(L * EMBED_DIM, 128) * 2
    tb = max(16, (target // row_bytes) // 16 * 16)
    tb = min(tb, _round_up(B, 16))
    # Prefer >= 2 grid steps: both v7x TensorCores get work and the x DMA
    # overlaps compute even for modest batches.
    if tb > 16 and _cdiv(B, tb) < 2:
        tb = max(16, _round_up(_cdiv(B, 2), 16))
    # Never declare more VMEM than the chip has.
    while tb > 16 and _vmem_need_bytes(tb, L) > int(vmem_cap * 0.85):
        tb = max(16, (tb // 2) // 16 * 16)
    return tb


def mlp_forward(x, y_rating, params, mode="train", tb=None):
    """x: (B, L, 300) f32; y_rating: (B, 1) f32 (ignored in eval mode)."""
    B, L, D = x.shape
    assert D == EMBED_DIM
    w0, b0, w1, b1, w2, b2 = params
    vmem_cap = _vmem_capacity_bytes()

    if tb is None:
        tb = _pick_tb(B, L, vmem_cap)
    tb = max(16, (int(tb) // 16) * 16)
    tb = min(tb, _round_up(B, 16))
    Bp = _round_up(B, tb)
    grid = Bp // tb

    # bf16 input halves the kernel's HBM read (documented quantization); pad the
    # batch, then flatten each doc to one row of L*300 concatenated embeddings
    # (a free, view-only reshape -> fully dense (tb, L*300) tiles, no per-sample
    # sublane padding).
    xb = x.astype(jnp.bfloat16)
    if Bp != B:
        xb = jnp.pad(xb, ((0, Bp - B), (0, 0), (0, 0)))
    x2d = xb.reshape(Bp, L * D)

    # Tile doc0's weight L times so dot(x_concat, w0_rep) == (sum_l x_l) @ w0:
    # the avg-pool rides on the (otherwise idle) MXU instead of the VPU.
    w0_rep = jnp.tile(w0.astype(jnp.bfloat16), (L, 1))          # (L*300, 10)

    vmem_limit = int(min(max(_vmem_need_bytes(tb, L), 8 << 20),
                         int(vmem_cap * 0.85)))

    const_map = lambda i: (0, 0)   # weights/biases: same block every step -> VMEM-resident

    out = pl.pallas_call(
        mlp_kernel,
        grid=(grid,),
        in_specs=[
            pl.BlockSpec((tb, L * D), lambda i: (i, 0)),        # x tile (pipelined)
            pl.BlockSpec(w0_rep.shape, const_map),
            pl.BlockSpec(b0.shape, const_map),
            pl.BlockSpec(w1.shape, const_map),
            pl.BlockSpec(b1.shape, const_map),
            pl.BlockSpec(w2.shape, const_map),
            pl.BlockSpec(b2.shape, const_map),
        ],
        out_specs=pl.BlockSpec((tb, PACK_W), lambda i: (i, 0)),
        out_shape=jax.ShapeDtypeStruct((Bp, PACK_W), jnp.float32),
        compiler_params=pltpu.CompilerParams(
            dimension_semantics=("parallel",),
            vmem_limit_bytes=vmem_limit),
    )(x2d, w0_rep, b0, w1, b1, w2, b2)

    ratings = out[:B, 0]                  # padded rows never contribute
    if mode == "train":
        # MSELoss(rating, target), mean reduction: rating has one feature, so the
        # mean over B samples equals PyTorch's mean over all elements.
        return jnp.mean((ratings - y_rating.reshape(-1)) ** 2)
    return ratings


def _reference(x, y_rating, params, mode="train"):
    """Pure-JAX reference of the PyTorch forward (full-precision matmuls)."""
    w0, b0, w1, b1, w2, b2 = params
    hi = jax.lax.Precision.HIGHEST
    pooled = jnp.mean(x, axis=1)
    h0 = jnp.maximum(jnp.dot(pooled, w0, precision=hi) + b0, 0.0)
    x1 = jnp.maximum(jnp.dot(h0, w1, precision=hi) + b1, 0.0)
    rating = jnp.dot(x1, w2, precision=hi) + b2
    if mode == "train":
        return jnp.mean((rating - y_rating) ** 2)
    return rating.reshape(rating.shape[0])


if __name__ == "__main__":
    key = jax.random.PRNGKey(0)
    k_param, k_x, k_y, k_x2, k_y2 = jax.random.split(key, 5)
    params = init_params(k_param)

    def quantized(p):
        # The kernel carries x and doc0's weight as bf16; quantize the reference
        # the same way so the check isolates kernel-path differences.
        return (p[0].astype(jnp.bfloat16).astype(jnp.float32),) + p[1:]

    RTOL, ATOL = 2e-3, 1e-3   # bf16 input/weight quantization + MXU accumulation

    # Case 1: small batch of 8-token docs with 300-d embeddings (single tile).
    B, L = 4, 8
    x = jax.random.normal(k_x, (B, L, EMBED_DIM), jnp.float32)
    y = jax.random.normal(k_y, (B, 1), jnp.float32)
    xq = x.astype(jnp.bfloat16).astype(jnp.float32)

    loss = jax.block_until_ready(mlp_forward(x, y, params, mode="train"))
    ratings = jax.block_until_ready(mlp_forward(x, y, params, mode="eval"))
    ref_loss = _reference(xq, y, quantized(params), "train")
    ref_ratings = _reference(xq, y, quantized(params), "eval")
    assert jnp.allclose(loss, ref_loss, rtol=RTOL, atol=ATOL), (loss, ref_loss)
    assert jnp.allclose(ratings, ref_ratings, rtol=RTOL, atol=ATOL)

    # Case 2: batch not a multiple of the tile, auto tile pick -> exercises
    # batch padding, grid > 1 and the "parallel" batch axis.
    B2, L2 = 20, 6
    x2 = jax.random.normal(k_x2, (B2, L2, EMBED_DIM), jnp.float32)
    y2 = jax.random.normal(k_y2, (B2, 1), jnp.float32)
    x2q = x2.astype(jnp.bfloat16).astype(jnp.float32)

    loss2 = jax.block_until_ready(mlp_forward(x2, y2, params, mode="train"))
    ratings2 = jax.block_until_ready(mlp_forward(x2, y2, params, mode="eval"))
    ref_loss2 = _reference(x2q, y2, quantized(params), "train")
    ref_ratings2 = _reference(x2q, y2, quantized(params), "eval")
    assert jnp.allclose(loss2, ref_loss2, rtol=RTOL, atol=ATOL), (loss2, ref_loss2)
    assert jnp.allclose(ratings2, ref_ratings2, rtol=RTOL, atol=ATOL)

    print("KERNEL_OK")
</pallas_src>

<mosaic_0001>
module attributes {stable_mosaic.version = 11 : i64} {
  func.func @mlp_kernel(%arg0: i32, %arg1: memref<16x2400xbf16, #tpu.memory_space<vmem>>, %arg2: memref<2400x10xbf16, #tpu.memory_space<vmem>>, %arg3: memref<1x10xf32, #tpu.memory_space<vmem>>, %arg4: memref<10x10xf32, #tpu.memory_space<vmem>>, %arg5: memref<1x10xf32, #tpu.memory_space<vmem>>, %arg6: memref<10x1xf32, #tpu.memory_space<vmem>>, %arg7: memref<1x1xf32, #tpu.memory_space<vmem>>, %arg8: memref<16x128xf32, #tpu.memory_space<vmem>>) attributes {dimension_semantics = [#tpu.dimension_semantics<parallel>], iteration_bounds = array<i64: 1>, scalar_prefetch = 0 : i64, scratch_operands = 0 : i64, tpu.core_type = #tpu.core_type<tc>, window_params = [{transform_indices = @transform_0, window_bounds = array<i64: 16, 2400>}, {pipeline_mode = #tpu.pipeline_mode<synchronous>, transform_indices = @transform_1, window_bounds = array<i64: 2400, 10>}, {pipeline_mode = #tpu.pipeline_mode<synchronous>, transform_indices = @transform_2, window_bounds = array<i64: 1, 10>}, {pipeline_mode = #tpu.pipeline_mode<synchronous>, transform_indices = @transform_3, window_bounds = array<i64: 10, 10>}, {pipeline_mode = #tpu.pipeline_mode<synchronous>, transform_indices = @transform_4, window_bounds = array<i64: 1, 10>}, {pipeline_mode = #tpu.pipeline_mode<synchronous>, transform_indices = @transform_5, window_bounds = array<i64: 10, 1>}, {pipeline_mode = #tpu.pipeline_mode<synchronous>, transform_indices = @transform_6, window_bounds = array<i64: 1, 1>}, {transform_indices = @transform_7, window_bounds = array<i64: 16, 128>}]} {
    %c0 = arith.constant 0 : index
    %c0_0 = arith.constant 0 : index
    %0 = vector.load %arg1[%c0, %c0_0] : memref<16x2400xbf16, #tpu.memory_space<vmem>>, vector<16x2400xbf16>
    %c0_1 = arith.constant 0 : index
    %c0_2 = arith.constant 0 : index
    %1 = vector.load %arg2[%c0_1, %c0_2] : memref<2400x10xbf16, #tpu.memory_space<vmem>>, vector<2400x10xbf16>
    %cst = arith.constant dense<0.000000e+00> : vector<16x10xf32>
    %2 = tpu.matmul %0, %1, %cst {dimension_numbers = #tpu.dot_dimension_numbers<[1], [0], [0], [1], [0, 0, 1, 1], [], []>} : vector<16x2400xbf16>, vector<2400x10xbf16>, vector<16x10xf32> -> vector<16x10xf32>
    %cst_3 = arith.constant 1.250000e-01 : f32
    %3 = vector.broadcast %cst_3 : f32 to vector<16x10xf32>
    %4 = arith.mulf %2, %3 : vector<16x10xf32>
    %c0_4 = arith.constant 0 : index
    %c0_5 = arith.constant 0 : index
    %5 = vector.load %arg3[%c0_4, %c0_5] : memref<1x10xf32, #tpu.memory_space<vmem>>, vector<1x10xf32>
    %6 = vector.broadcast %5 : vector<1x10xf32> to vector<16x10xf32>
    %7 = arith.addf %4, %6 : vector<16x10xf32>
    %cst_6 = arith.constant 0.000000e+00 : f32
    %8 = vector.broadcast %cst_6 : f32 to vector<16x10xf32>
    %9 = arith.maximumf %7, %8 : vector<16x10xf32>
    %c0_7 = arith.constant 0 : index
    %c0_8 = arith.constant 0 : index
    %10 = vector.load %arg4[%c0_7, %c0_8] : memref<10x10xf32, #tpu.memory_space<vmem>>, vector<10x10xf32>
    %cst_9 = arith.constant dense<0.000000e+00> : vector<16x10xf32>
    %11 = tpu.matmul %9, %10, %cst_9 {dimension_numbers = #tpu.dot_dimension_numbers<[1], [0], [0], [1], [0, 0, 1, 1], [], []>} : vector<16x10xf32>, vector<10x10xf32>, vector<16x10xf32> -> vector<16x10xf32>
    %c0_10 = arith.constant 0 : index
    %c0_11 = arith.constant 0 : index
    %12 = vector.load %arg5[%c0_10, %c0_11] : memref<1x10xf32, #tpu.memory_space<vmem>>, vector<1x10xf32>
    %13 = vector.broadcast %12 : vector<1x10xf32> to vector<16x10xf32>
    %14 = arith.addf %11, %13 : vector<16x10xf32>
    %cst_12 = arith.constant 0.000000e+00 : f32
    %15 = vector.broadcast %cst_12 : f32 to vector<16x10xf32>
    %16 = arith.maximumf %14, %15 : vector<16x10xf32>
    %c0_13 = arith.constant 0 : index
    %c0_14 = arith.constant 0 : index
    %17 = vector.load %arg6[%c0_13, %c0_14] : memref<10x1xf32, #tpu.memory_space<vmem>>, vector<10x1xf32>
    %cst_15 = arith.constant dense<0.000000e+00> : vector<16x1xf32>
    %18 = tpu.matmul %16, %17, %cst_15 {dimension_numbers = #tpu.dot_dimension_numbers<[1], [0], [0], [1], [0, 0, 1, 1], [], []>} : vector<16x10xf32>, vector<10x1xf32>, vector<16x1xf32> -> vector<16x1xf32>
    %c0_16 = arith.constant 0 : index
    %c0_17 = arith.constant 0 : index
    %19 = vector.load %arg7[%c0_16, %c0_17] : memref<1x1xf32, #tpu.memory_space<vmem>>, vector<1x1xf32>
    %20 = vector.broadcast %19 : vector<1x1xf32> to vector<16x1xf32>
    %21 = arith.addf %18, %20 : vector<16x1xf32>
    %22 = vector.shape_cast %21 : vector<16x1xf32> to vector<16x1xf32>
    %23 = vector.broadcast %22 : vector<16x1xf32> to vector<16x128xf32>
    %c0_18 = arith.constant 0 : index
    %c0_19 = arith.constant 0 : index
    %24 = vector.load %arg8[%c0_18, %c0_19] : memref<16x128xf32, #tpu.memory_space<vmem>>, vector<16x128xf32>
    tpu.vector_store %arg8[%c0_18, %c0_19], %23 {strides = array<i32>} : memref<16x128xf32, #tpu.memory_space<vmem>>, vector<16x128xf32>,
    return
  }
  func.func @transform_0(%arg0: i32) -> (i32, i32) {
    %c0_i32 = arith.constant 0 : i32
    %c0_i32_0 = arith.constant 0 : i32
    return %arg0, %c0_i32 : i32, i32
  }
  func.func @transform_1(%arg0: i32) -> (i32, i32) {
    %c0_i32 = arith.constant 0 : i32
    %c0_i32_0 = arith.constant 0 : i32
    %c0_i32_1 = arith.constant 0 : i32
    return %c0_i32, %c0_i32_0 : i32, i32
  }
  func.func @transform_2(%arg0: i32) -> (i32, i32) {
    %c0_i32 = arith.constant 0 : i32
    %c0_i32_0 = arith.constant 0 : i32
    %c0_i32_1 = arith.constant 0 : i32
    return %c0_i32, %c0_i32_0 : i32, i32
  }
  func.func @transform_3(%arg0: i32) -> (i32, i32) {
    %c0_i32 = arith.constant 0 : i32
    %c0_i32_0 = arith.constant 0 : i32
    %c0_i32_1 = arith.constant 0 : i32
    return %c0_i32, %c0_i32_0 : i32, i32
  }
  func.func @transform_4(%arg0: i32) -> (i32, i32) {
    %c0_i32 = arith.constant 0 : i32
    %c0_i32_0 = arith.constant 0 : i32
    %c0_i32_1 = arith.constant 0 : i32
    return %c0_i32, %c0_i32_0 : i32, i32
  }
  func.func @transform_5(%arg0: i32) -> (i32, i32) {
    %c0_i32 = arith.constant 0 : i32
    %c0_i32_0 = arith.constant 0 : i32
    %c0_i32_1 = arith.constant 0 : i32
    return %c0_i32, %c0_i32_0 : i32, i32
  }
  func.func @transform_6(%arg0: i32) -> (i32, i32) {
    %c0_i32 = arith.constant 0 : i32
    %c0_i32_0 = arith.constant 0 : i32
    %c0_i32_1 = arith.constant 0 : i32
    return %c0_i32, %c0_i32_0 : i32, i32
  }
  func.func @transform_7(%arg0: i32) -> (i32, i32) {
    %c0_i32 = arith.constant 0 : i32
    %c0_i32_0 = arith.constant 0 : i32
    return %arg0, %c0_i32 : i32, i32
  }
}

</mosaic_0001>

<bundles_post_ra>
// kernel: tpu_custom_call.1
= control target key start
LH: loop header
LB: loop body
LE: loop exit
PB: predicated region body
PF: predicated region fallthrough
CT: control target
= control target key end

     0   :  { %s3237_s0 = inlined_call_operand.vmem [shape: bf16[16,2400], index: 0, kind: input, shape index: {}]   ;;  %s3238_s1 = inlined_call_operand.vmem [shape: bf16[2400,10], index: 1, kind: input, shape index: {}]   ;;  %s3239_s2 = inlined_call_operand.vmem [shape: f32[1,10], index: 2, kind: input, shape index: {}]   ;;  %s3240_s3 = inlined_call_operand.vmem [shape: f32[10,10], index: 3, kind: input, shape index: {}]   ;;  %s3241_s4 = inlined_call_operand.vmem [shape: f32[1,10], index: 4, kind: input, shape index: {}]   ;;  %s3242_s5 = inlined_call_operand.vmem [shape: f32[10,1], index: 5, kind: input, shape index: {}]   ;;  %s3243_s6 = inlined_call_operand.<no memory space> [shape: f32[1,1], index: 6, kind: input, shape index: {}]   ;;  %s3244_s7 = inlined_call_operand.hbm [shape: f32[16,128], index: 7, kind: output, shape index: {}]  }
   0x1   :  { %v12_v0 = vstv %s3243_s6 }
   0x2   :  { %13 = vst [vmem:[#allocation2] sm:$0x1] %v12_v0 }
   0x3   :  { %v2432_v1 = vld [vmem:[%s3238_s1 + $0x40] sm:$0xff]   ;;  %v2436_v5 = vld [vmem:[%s3238_s1 + $0x48] sm:$0xff]   ;;  %v2440_v9 = vld [vmem:[%s3238_s1 + $0x50] sm:$0xff]   ;;  %vm2635_vm0 = vmmov 0  }
   0x4   :  { %v2433_v2 = vld [vmem:[%s3238_s1 + $0xc0] sm:$0xff]   ;;  %2169 = vmatprep.subr.bf16.mxu0 %v2432_v1  ;;  %v2437_v6 = vld [vmem:[%s3238_s1 + $0xc8] sm:$0xff]   ;;  %v2441_v10 = vld [vmem:[%s3238_s1 + $0xd0] sm:$0xff]  }
   0x5   :  { %v2434_v3 = vld [vmem:[%s3238_s1] sm:$0xff]   ;;  %2191 = vmatprep.subr.bf16.mxu1 %v2433_v2  ;;  %v2438_v7 = vld [vmem:[%s3238_s1 + $0x8] sm:$0xff]   ;;  %v2442_v11 = vld [vmem:[%s3238_s1 + $0x10] sm:$0xff]  }
   0x6   :  { %v2435_v4 = vld [vmem:[%s3238_s1 + $0x80] sm:$0xff]   ;;  %2170 = vmatpush3.bf16.msra.mxu0 %v2434_v3  ;;  %v2439_v8 = vld [vmem:[%s3238_s1 + $0x88] sm:$0xff]   ;;  %v2443_v12 = vld [vmem:[%s3238_s1 + $0x90] sm:$0xff]  }
   0x7   :  { %2192 = vmatpush3.bf16.msra.mxu1 %v2435_v4  ;;  %2171 = vmatprep.subr.bf16.mxu0 %v2436_v5  ;;  %v2444_v13 = vld [vmem:[%s3238_s1 + $0x58] sm:$0xff]   ;;  %v2448_v17 = vld [vmem:[%s3238_s1 + $0x60] sm:$0xff]   ;;  %v2452_v21 = vld [vmem:[%s3238_s1 + $0x68] sm:$0xff]  }
   0x8   :  { %2193 = vmatprep.subr.bf16.mxu1 %v2437_v6  ;;  %v2445_v14 = vld [vmem:[%s3238_s1 + $0xd8] sm:$0xff]   ;;  %v2449_v18 = vld [vmem:[%s3238_s1 + $0xe0] sm:$0xff]   ;;  %v2453_v22 = vld [vmem:[%s3238_s1 + $0xe8] sm:$0xff]  }
   0x9   :  { %v2446_v15 = vld [vmem:[%s3238_s1 + $0x18] sm:$0xff]   ;;  %v2450_v19 = vld [vmem:[%s3238_s1 + $0x20] sm:$0xff]   ;;  %v2454_v23 = vld [vmem:[%s3238_s1 + $0x28] sm:$0xff]  }
   0xa   :  { %2172 = vmatpush3.bf16.msra.mxu0 %v2438_v7  ;;  %v2447_v16 = vld [vmem:[%s3238_s1 + $0x98] sm:$0xff]   ;;  %v2451_v20 = vld [vmem:[%s3238_s1 + $0xa0] sm:$0xff]   ;;  %v2455_v24 = vld [vmem:[%s3238_s1 + $0xa8] sm:$0xff]  }
   0xb   :  { %2194 = vmatpush3.bf16.msra.mxu1 %v2439_v8  ;;  %2173 = vmatprep.subr.bf16.mxu0 %v2440_v9  ;;  %v2456_v25 = vld [vmem:[%s3238_s1 + $0x70] sm:$0xff]   ;;  %v2460_v29 = vld [vmem:[%s3238_s1 + $0x78] sm:$0xff]   ;;  %v2464_v33 = vld [vmem:[%s3237_s0] ss:$76 sps:$4 sm:$0xff]  }
   0xc   :  { %2195 = vmatprep.subr.bf16.mxu1 %v2441_v10  ;;  %v2457_v26 = vld [vmem:[%s3238_s1 + $0xf0] sm:$0xff]   ;;  %v2461_v30 = vld [vmem:[%s3238_s1 + $0xf8] sm:$0xff]   ;;  %v2470_v37 = vld [vmem:[%s3238_s1 + $0x140] sm:$0xff]  }
   0xd   :  { %v2458_v27 = vld [vmem:[%s3238_s1 + $0x30] sm:$0xff]   ;;  %v2462_v31 = vld [vmem:[%s3238_s1 + $0x38] sm:$0xff]   ;;  %v2471_v38 = vld [vmem:[%s3238_s1 + $0x100] sm:$0xff]  }
   0xe   :  { %2174 = vmatpush3.bf16.msra.mxu0 %v2442_v11  ;;  %v2459_v28 = vld [vmem:[%s3238_s1 + $0xb0] sm:$0xff]   ;;  %v2463_v32 = vld [vmem:[%s3238_s1 + $0xb8] sm:$0xff]   ;;  %v2472_v39 = vld [vmem:[%s3238_s1 + $0x1c0] sm:$0xff]  }
   0xf   :  { %2196 = vmatpush3.bf16.msra.mxu1 %v2443_v12  ;;  %2175 = vmatprep.subr.bf16.mxu0 %v2444_v13  ;;  %v2466_v34 = vld [vmem:[%s3237_s0 + $0x4] ss:$76 sps:$4 sm:$0xff]   ;;  %v2467_v35 = vld [vmem:[%s3237_s0 + $0x8] ss:$76 sps:$4 sm:$0xff]   ;;  %v2469_v36 = vld [vmem:[%s3237_s0 + $0xc] ss:$76 sps:$4 sm:$0xff]  }
  0x10   :  { %2197 = vmatprep.subr.bf16.mxu1 %v2445_v14  ;;  %1381 = vmatprep.mubr.bf16.mxu0 %v2466_v34  ;;  %v2473_v40 = vld [vmem:[%s3238_s1 + $0x180] sm:$0xff]   ;;  %v2474_v41 = vld [vmem:[%s3238_s1 + $0x148] sm:$0xff]   ;;  %v2478_v45 = vld [vmem:[%s3238_s1 + $0x150] sm:$0xff]  }
  0x11   :  { %1422 = vmatprep.mubr.bf16.mxu1 %v2469_v36  ;;  %v2475_v42 = vld [vmem:[%s3238_s1 + $0x108] sm:$0xff]   ;;  %v2479_v46 = vld [vmem:[%s3238_s1 + $0x110] sm:$0xff]   ;;  %v2482_v49 = vld [vmem:[%s3238_s1 + $0x158] sm:$0xff]  }
  0x12   :  { %2176 = vmatpush3.bf16.msra.mxu0 %v2446_v15  ;;  %v2476_v43 = vld [vmem:[%s3238_s1 + $0x1c8] sm:$0xff]   ;;  %v2480_v47 = vld [vmem:[%s3238_s1 + $0x1d0] sm:$0xff]   ;;  %v2483_v50 = vld [vmem:[%s3238_s1 + $0x118] sm:$0xff]  }
  0x13   :  { %2198 = vmatpush3.bf16.msra.mxu1 %v2447_v16  ;;  %2177 = vmatprep.subr.bf16.mxu0 %v2448_v17  ;;  %v2477_v44 = vld [vmem:[%s3238_s1 + $0x188] sm:$0xff]   ;;  %v2481_v48 = vld [vmem:[%s3238_s1 + $0x190] sm:$0xff]   ;;  %v2484_v51 = vld [vmem:[%s3238_s1 + $0x1d8] sm:$0xff]  }
  0x14   :  { %2199 = vmatprep.subr.bf16.mxu1 %v2449_v18  ;;  %v2485_v52 = vld [vmem:[%s3238_s1 + $0x198] sm:$0xff]   ;;  %v2486_v53 = vld [vmem:[%s3238_s1 + $0x160] sm:$0xff]   ;;  %v2490_v57 = vld [vmem:[%s3238_s1 + $0x168] sm:$0xff]  }
  0x15   :  { %v2487_v54 = vld [vmem:[%s3238_s1 + $0x120] sm:$0xff]   ;;  %v2491_v58 = vld [vmem:[%s3238_s1 + $0x128] sm:$0xff]   ;;  %v2494_v61 = vld [vmem:[%s3238_s1 + $0x170] sm:$0xff]  }
  0x16   :  { %2178 = vmatpush3.bf16.msra.mxu0 %v2450_v19  ;;  %v2488_v55 = vld [vmem:[%s3238_s1 + $0x1e0] sm:$0xff]   ;;  %v2492_v59 = vld [vmem:[%s3238_s1 + $0x1e8] sm:$0xff]   ;;  %v2495_v62 = vld [vmem:[%s3238_s1 + $0x130] sm:$0xff]  }
  0x17   :  { %2200 = vmatpush3.bf16.msra.mxu1 %v2451_v20  ;;  %2179 = vmatprep.subr.bf16.mxu0 %v2452_v21  ;;  %v2489_v56 = vld [vmem:[%s3238_s1 + $0x1a0] sm:$0xff]   ;;  %v2493_v60 = vld [vmem:[%s3238_s1 + $0x1a8] sm:$0xff]   ;;  %v2496_v63 = vld [vmem:[%s3238_s1 + $0x1f0] sm:$0xff]  }
  0x18   :  { %2201 = vmatprep.subr.bf16.mxu1 %v2453_v22  ;;  %v2497_v0 = vld [vmem:[%s3238_s1 + $0x1b0] sm:$0xff]   ;;  %v2498_v1 = vld [vmem:[%s3238_s1 + $0x178] sm:$0xff]   ;;  %v2505_v7 = vld [vmem:[%s3238_s1 + $0x240] sm:$0xff]  }
  0x19   :  { %v2499_v2 = vld [vmem:[%s3238_s1 + $0x138] sm:$0xff]   ;;  %v2503_v5 = vld [vmem:[%s3237_s0 + $0x14] ss:$76 sps:$4 sm:$0xff]   ;;  %v2512_v13 = vld [vmem:[%s3238_s1 + $0x248] sm:$0xff]  }
  0x1a   :  { %2180 = vmatpush3.bf16.msra.mxu0 %v2454_v23  ;;  %v2500_v3 = vld [vmem:[%s3238_s1 + $0x1f8] sm:$0xff]   ;;  %v2509_v10 = vld [vmem:[%s3238_s1 + $0x200] sm:$0xff]   ;;  %v2513_v14 = vld [vmem:[%s3238_s1 + $0x208] sm:$0xff]  }
  0x1b   :  { %2202 = vmatpush3.bf16.msra.mxu1 %v2455_v24  ;;  %2181 = vmatprep.subr.bf16.mxu0 %v2456_v25  ;;  %v2501_v4 = vld [vmem:[%s3237_s0 + $0x10] ss:$76 sps:$4 sm:$0xff]   ;;  %v2506_v8 = vld [vmem:[%s3237_s0 + $0x18] ss:$76 sps:$4 sm:$0xff]   ;;  %v2514_v15 = vld [vmem:[%s3238_s1 + $0x2c8] sm:$0xff]  }
  0x1c   :  { %2203 = vmatprep.subr.bf16.mxu1 %v2457_v26  ;;  %v2504_v6 = vld [vmem:[%s3238_s1 + $0x1b8] sm:$0xff]   ;;  %v2510_v11 = vld [vmem:[%s3238_s1 + $0x2c0] sm:$0xff]   ;;  %v2515_v16 = vld [vmem:[%s3238_s1 + $0x288] sm:$0xff]  }
  0x1d   :  { %v2508_v9 = vld [vmem:[%s3237_s0 + $0x1c] ss:$76 sps:$4 sm:$0xff]   ;;  %v2511_v12 = vld [vmem:[%s3238_s1 + $0x280] sm:$0xff]   ;;  %v2516_v17 = vld [vmem:[%s3238_s1 + $0x250] sm:$0xff]  }
  0x1e   :  { %2182 = vmatpush3.bf16.msra.mxu0 %v2458_v27  ;;  %v2517_v18 = vld [vmem:[%s3238_s1 + $0x210] sm:$0xff]   ;;  %v2520_v21 = vld [vmem:[%s3238_s1 + $0x258] sm:$0xff]   ;;  %v2524_v25 = vld [vmem:[%s3238_s1 + $0x260] sm:$0xff]  }
  0x1f   :  { %2204 = vmatpush3.bf16.msra.mxu1 %v2459_v28  ;;  %2183 = vmatprep.subr.bf16.mxu0 %v2460_v29  ;;  %v2518_v19 = vld [vmem:[%s3238_s1 + $0x2d0] sm:$0xff]   ;;  %v2521_v22 = vld [vmem:[%s3238_s1 + $0x218] sm:$0xff]   ;;  %v2525_v26 = vld [vmem:[%s3238_s1 + $0x220] sm:$0xff]  }
  0x20   :  { %2205 = vmatprep.subr.bf16.mxu1 %v2461_v30  ;;  %v2519_v20 = vld [vmem:[%s3238_s1 + $0x290] sm:$0xff]   ;;  %v2522_v23 = vld [vmem:[%s3238_s1 + $0x2d8] sm:$0xff]   ;;  %v2526_v27 = vld [vmem:[%s3238_s1 + $0x2e0] sm:$0xff]  }
  0x21   :  { %v2523_v24 = vld [vmem:[%s3238_s1 + $0x298] sm:$0xff]   ;;  %v2527_v28 = vld [vmem:[%s3238_s1 + $0x2a0] sm:$0xff]   ;;  %v2528_v29 = vld [vmem:[%s3238_s1 + $0x268] sm:$0xff]  }
  0x22   :  { %2184 = vmatpush3.bf16.msra.mxu0 %v2462_v31  ;;  %v2529_v30 = vld [vmem:[%s3238_s1 + $0x228] sm:$0xff]   ;;  %v2533_v34 = vld [vmem:[%s3238_s1 + $0x230] sm:$0xff]  }
  0x23   :  { %2206 = vmatpush3.bf16.msra.mxu1 %v2463_v32  ;;  %2213 = vmatprep.subr.bf16.mxu0 %v2470_v37  ;;  %v2530_v31 = vld [vmem:[%s3238_s1 + $0x2e8] sm:$0xff]   ;;  %v2535_v36 = vld [vmem:[%s3238_s1 + $0x2b0] sm:$0xff]   ;;  %v2536_v37 = vld [vmem:[%s3238_s1 + $0x278] sm:$0xff]  }
  0x24   :  { %2235 = vmatprep.subr.bf16.mxu1 %v2472_v39  ;;  %v2531_v32 = vld [vmem:[%s3238_s1 + $0x2a8] sm:$0xff]   ;;  %v2538_v39 = vld [vmem:[%s3238_s1 + $0x2f8] sm:$0xff]  }
  0x25   :  { %1382 = vmatmul.mubr.bf16.vlgmr.msra.gmra.mrb[0].mxu0 %v2464_v33  ;;  %v2532_v33 = vld [vmem:[%s3238_s1 + $0x270] sm:$0xff]  }
  0x26   :  { %1423 = vmatmul.mubr.bf16.vlgmr.msra.gmra.mrb[0].mxu1 %v2467_v35  ;;  %2214 = vmatpush3.bf16.msra.mxu0 %v2471_v38  ;;  %v2534_v35 = vld [vmem:[%s3238_s1 + $0x2f0] sm:$0xff]   ;;  %v2537_v38 = vld [vmem:[%s3238_s1 + $0x238] sm:$0xff]  }
  0x27   :  { %2236 = vmatpush3.bf16.msra.mxu1 %v2473_v40  ;;  %2215 = vmatprep.subr.bf16.mxu0 %v2474_v41  ;;  %v2539_v40 = vld [vmem:[%s3237_s0 + $0x20] ss:$76 sps:$4 sm:$0xff]   ;;  %v2541_v41 = vld [vmem:[%s3237_s0 + $0x24] ss:$76 sps:$4 sm:$0xff]  }
  0x28   :  { %2237 = vmatprep.subr.bf16.mxu1 %v2476_v43  ;;  %1463 = vmatprep.mubr.bf16.mxu0 %v2503_v5  ;;  %v2543_v43 = vld [vmem:[%s3238_s1 + $0x340] sm:$0xff]   ;;  %v2570_v5 = vld [vmem:[%s3238_s1 + $0x370] sm:$0xff]  }
  0x29   :  { %1504 = vmatprep.mubr.bf16.mxu1 %v2508_v9  ;;  %v2574_v9 = vld [vmem:[%s3238_s1 + $0x378] sm:$0xff]  }
  0x2a   :  { %2216 = vmatpush3.bf16.msra.mxu0 %v2475_v42  ;;  %v2542_v42 = vld [vmem:[%s3238_s1 + $0x2b8] sm:$0xff]  }
  0x2b   :  { %2238 = vmatpush3.bf16.msra.mxu1 %v2477_v44  ;;  %2217 = vmatprep.subr.bf16.mxu0 %v2478_v45  ;;  %v2544_v44 = vld [vmem:[%s3237_s0 + $0x28] ss:$76 sps:$4 sm:$0xff]   ;;  %v2546_v45 = vld [vmem:[%s3237_s0 + $0x2c] ss:$76 sps:$4 sm:$0xff]  }
  0x2c   :  { %2239 = vmatprep.subr.bf16.mxu1 %v2480_v47  ;;  %v2548_v47 = vld [vmem:[%s3238_s1 + $0x3c0] sm:$0xff]  }
  0x2e   :  { %2218 = vmatpush3.bf16.msra.mxu0 %v2479_v46  ;;  %v2547_v46 = vld [vmem:[%s3238_s1 + $0x300] sm:$0xff]  }
  0x2f   :  { %2240 = vmatpush3.bf16.msra.mxu1 %v2481_v48  ;;  %2219 = vmatprep.subr.bf16.mxu0 %v2482_v49  ;;  %v2549_v48 = vld [vmem:[%s3238_s1 + $0x380] sm:$0xff]   ;;  %v2550_v49 = vld [vmem:[%s3238_s1 + $0x348] sm:$0xff]  }
  0x30   :  { %2241 = vmatprep.subr.bf16.mxu1 %v2484_v51  ;;  %v2552_v51 = vld [vmem:[%s3238_s1 + $0x3c8] sm:$0xff]  }
  0x32   :  { %2220 = vmatpush3.bf16.msra.mxu0 %v2483_v50  ;;  %v2551_v50 = vld [vmem:[%s3238_s1 + $0x308] sm:$0xff]  }
  0x33   :  { %2242 = vmatpush3.bf16.msra.mxu1 %v2485_v52  ;;  %2221 = vmatprep.subr.bf16.mxu0 %v2486_v53  ;;  %v2553_v52 = vld [vmem:[%s3238_s1 + $0x388] sm:$0xff]   ;;  %v2554_v53 = vld [vmem:[%s3238_s1 + $0x350] sm:$0xff]  }
  0x34   :  { %2243 = vmatprep.subr.bf16.mxu1 %v2488_v55  ;;  %v2556_v55 = vld [vmem:[%s3238_s1 + $0x3d0] sm:$0xff]  }
  0x36   :  { %2222 = vmatpush3.bf16.msra.mxu0 %v2487_v54  ;;  %v2555_v54 = vld [vmem:[%s3238_s1 + $0x310] sm:$0xff]  }
  0x37   :  { %2244 = vmatpush3.bf16.msra.mxu1 %v2489_v56  ;;  %2223 = vmatprep.subr.bf16.mxu0 %v2490_v57  ;;  %v2557_v56 = vld [vmem:[%s3238_s1 + $0x390] sm:$0xff]   ;;  %v2558_v57 = vld [vmem:[%s3238_s1 + $0x358] sm:$0xff]  }
  0x38   :  { %2245 = vmatprep.subr.bf16.mxu1 %v2492_v59  ;;  %v2560_v59 = vld [vmem:[%s3238_s1 + $0x3d8] sm:$0xff]  }
  0x3a   :  { %2224 = vmatpush3.bf16.msra.mxu0 %v2491_v58  ;;  %v2559_v58 = vld [vmem:[%s3238_s1 + $0x318] sm:$0xff]  }
  0x3b   :  { %2246 = vmatpush3.bf16.msra.mxu1 %v2493_v60  ;;  %2225 = vmatprep.subr.bf16.mxu0 %v2494_v61  ;;  %v2561_v60 = vld [vmem:[%s3238_s1 + $0x398] sm:$0xff]   ;;  %v2562_v61 = vld [vmem:[%s3238_s1 + $0x360] sm:$0xff]  }
  0x3c   :  { %2247 = vmatprep.subr.bf16.mxu1 %v2496_v63  ;;  %v2564_v63 = vld [vmem:[%s3238_s1 + $0x3e0] sm:$0xff]  }
  0x3e   :  { %2226 = vmatpush3.bf16.msra.mxu0 %v2495_v62  ;;  %v2563_v62 = vld [vmem:[%s3238_s1 + $0x320] sm:$0xff]  }
  0x3f   :  { %2248 = vmatpush3.bf16.msra.mxu1 %v2497_v0  ;;  %2227 = vmatprep.subr.bf16.mxu0 %v2498_v1  ;;  %v2565_v0 = vld [vmem:[%s3238_s1 + $0x3a0] sm:$0xff]   ;;  %v2566_v1 = vld [vmem:[%s3238_s1 + $0x368] sm:$0xff]  }
  0x40   :  { %2249 = vmatprep.subr.bf16.mxu1 %v2500_v3  ;;  %v2568_v3 = vld [vmem:[%s3238_s1 + $0x3e8] sm:$0xff]  }
  0x42   :  { %2228 = vmatpush3.bf16.msra.mxu0 %v2499_v2  ;;  %v2567_v2 = vld [vmem:[%s3238_s1 + $0x328] sm:$0xff]  }
  0x43   :  { %2250 = vmatpush3.bf16.msra.mxu1 %v2504_v6  ;;  %2257 = vmatprep.subr.bf16.mxu0 %v2505_v7  ;;  %v2571_v6 = vld [vmem:[%s3238_s1 + $0x330] sm:$0xff]  }
  0x44   :  { %2279 = vmatprep.subr.bf16.mxu1 %v2510_v11  ;;  %v2572_v7 = vld [vmem:[%s3238_s1 + $0x3f0] sm:$0xff]   ;;  %v2576_v11 = vld [vmem:[%s3238_s1 + $0x3f8] sm:$0xff]  }
  0x45   :  { %1464 = vmatmul.mubr.bf16.vlgmr.msra.gmra.mrb[4].mxu0 %v2501_v4  ;;  %v2569_v4 = vld [vmem:[%s3238_s1 + $0x3a8] sm:$0xff]  }
  0x46   :  { %2258 = vmatpush3.bf16.msra.mxu0 %v2509_v10  ;;  %1505 = vmatmul.mubr.bf16.vlgmr.msra.gmra.mrb[4].mxu1 %v2506_v8  ;;  %v2573_v8 = vld [vmem:[%s3238_s1 + $0x3b0] sm:$0xff]   ;;  %v2575_v10 = vld [vmem:[%s3238_s1 + $0x338] sm:$0xff]  }
  0x47   :  { %2280 = vmatpush3.bf16.msra.mxu1 %v2511_v12  ;;  %2259 = vmatprep.subr.bf16.mxu0 %v2512_v13  ;;  %v2577_v12 = vld [vmem:[%s3237_s0 + $0x30] ss:$76 sps:$4 sm:$0xff]   ;;  %v2579_v13 = vld [vmem:[%s3237_s0 + $0x34] ss:$76 sps:$4 sm:$0xff]  }
  0x48   :  { %2281 = vmatprep.subr.bf16.mxu1 %v2514_v15  ;;  %1545 = vmatprep.mubr.bf16.mxu0 %v2541_v41  ;;  %v2581_v15 = vld [vmem:[%s3238_s1 + $0x440] sm:$0xff]  }
  0x49   :  { %1586 = vmatprep.mubr.bf16.mxu1 %v2546_v45 }
  0x4a   :  { %2260 = vmatpush3.bf16.msra.mxu0 %v2513_v14  ;;  %v2580_v14 = vld [vmem:[%s3238_s1 + $0x3b8] sm:$0xff]  }
  0x4b   :  { %2282 = vmatpush3.bf16.msra.mxu1 %v2515_v16  ;;  %2261 = vmatprep.subr.bf16.mxu0 %v2516_v17  ;;  %v2582_v16 = vld [vmem:[%s3237_s0 + $0x38] ss:$76 sps:$4 sm:$0xff]   ;;  %v2584_v17 = vld [vmem:[%s3237_s0 + $0x3c] ss:$76 sps:$4 sm:$0xff]  }
  0x4c   :  { %2283 = vmatprep.subr.bf16.mxu1 %v2518_v19  ;;  %v2634_v19 = vmov 0.0  }
  0x4e   :  { %2262 = vmatpush3.bf16.msra.mxu0 %v2517_v18  ;;  %v2585_v18 = vld [vmem:[%s3238_s1 + $0x400] sm:$0xff]  }
  0x4f   :  { %2284 = vmatpush3.bf16.msra.mxu1 %v2519_v20  ;;  %2263 = vmatprep.subr.bf16.mxu0 %v2520_v21  ;;  %v2586_v20 = vld [vmem:[%s3238_s1 + $0x448] sm:$0xff]  }
  0x50   :  { %2285 = vmatprep.subr.bf16.mxu1 %v2522_v23  ;;  %v2587_v21 = vld [vmem:[%s3238_s1 + $0x408] sm:$0xff]   ;;  %v2590_v23 = vld [vmem:[%s3238_s1 + $0x480] sm:$0xff]  }
  0x52   :  { %2264 = vmatpush3.bf16.msra.mxu0 %v2521_v22  ;;  %v2588_v22 = vld [vmem:[%s3238_s1 + $0x450] sm:$0xff]  }
  0x53   :  { %2286 = vmatpush3.bf16.msra.mxu1 %v2523_v24  ;;  %2265 = vmatprep.subr.bf16.mxu0 %v2524_v25  ;;  %v2589_v24 = vld [vmem:[%s3238_s1 + $0x410] sm:$0xff]   ;;  %v2591_v25 = vld [vmem:[%s3238_s1 + $0x458] sm:$0xff]  }
  0x54   :  { %2287 = vmatprep.subr.bf16.mxu1 %v2526_v27  ;;  %v2592_v27 = vld [vmem:[%s3238_s1 + $0x418] sm:$0xff]  }
  0x56   :  { %2266 = vmatpush3.bf16.msra.mxu0 %v2525_v26  ;;  %v2593_v26 = vld [vmem:[%s3238_s1 + $0x488] sm:$0xff]  }
  0x57   :  { %2288 = vmatpush3.bf16.msra.mxu1 %v2527_v28  ;;  %2267 = vmatprep.subr.bf16.mxu0 %v2528_v29  ;;  %v2594_v28 = vld [vmem:[%s3238_s1 + $0x460] sm:$0xff]   ;;  %v2596_v29 = vld [vmem:[%s3238_s1 + $0x490] sm:$0xff]  }
  0x58   :  { %2289 = vmatprep.subr.bf16.mxu1 %v2530_v31  ;;  %v2597_v31 = vld [vmem:[%s3238_s1 + $0x468] sm:$0xff]  }
  0x5a   :  { %2268 = vmatpush3.bf16.msra.mxu0 %v2529_v30  ;;  %v2595_v30 = vld [vmem:[%s3238_s1 + $0x420] sm:$0xff]  }
  0x5b   :  { %2290 = vmatpush3.bf16.msra.mxu1 %v2531_v32  ;;  %2269 = vmatprep.subr.bf16.mxu0 %v2532_v33  ;;  %v2599_v32 = vld [vmem:[%s3238_s1 + $0x498] sm:$0xff]   ;;  %v2598_v33 = vld [vmem:[%s3238_s1 + $0x428] sm:$0xff]  }
  0x5c   :  { %2291 = vmatprep.subr.bf16.mxu1 %v2534_v35  ;;  %v2602_v35 = vld [vmem:[%s3238_s1 + $0x4a0] sm:$0xff]  }
  0x5e   :  { %2270 = vmatpush3.bf16.msra.mxu0 %v2533_v34  ;;  %v2600_v34 = vld [vmem:[%s3238_s1 + $0x470] sm:$0xff]  }
  0x5f   :  { %2292 = vmatpush3.bf16.msra.mxu1 %v2535_v36  ;;  %2271 = vmatprep.subr.bf16.mxu0 %v2536_v37  ;;  %v2607_v36 = vld [vmem:[%s3237_s0 + $0x44] ss:$76 sps:$4 sm:$0xff]  }
  0x60   :  { %2293 = vmatprep.subr.bf16.mxu1 %v2538_v39  ;;  %v2601_v37 = vld [vmem:[%s3238_s1 + $0x430] sm:$0xff]   ;;  %v2608_v39 = vld [vmem:[%s3238_s1 + $0x4a8] sm:$0xff]  }
  0x62   :  { %2272 = vmatpush3.bf16.msra.mxu0 %v2537_v38  ;;  %v2603_v38 = vld [vmem:[%s3238_s1 + $0x478] sm:$0xff]  }
  0x63   :  { %2294 = vmatpush3.bf16.msra.mxu1 %v2542_v42  ;;  %2301 = vmatprep.subr.bf16.mxu0 %v2543_v43 }
  0x64   :  { %2323 = vmatprep.subr.bf16.mxu1 %v2548_v47 }
  0x65   :  { %1546 = vmatmul.mubr.bf16.vlgmr.msra.gmra.mrb[8].mxu0 %v2539_v40 }
  0x66   :  { %2302 = vmatpush3.bf16.msra.mxu0 %v2547_v46  ;;  %1587 = vmatmul.mubr.bf16.vlgmr.msra.gmra.mrb[8].mxu1 %v2544_v44 }
  0x67   :  { %2324 = vmatpush3.bf16.msra.mxu1 %v2549_v48  ;;  %2303 = vmatprep.subr.bf16.mxu0 %v2550_v49 }
  0x68   :  { %2325 = vmatprep.subr.bf16.mxu1 %v2552_v51  ;;  %1627 = vmatprep.mubr.bf16.mxu0 %v2579_v13 }
  0x69   :  { %1668 = vmatprep.mubr.bf16.mxu1 %v2584_v17 }
  0x6a   :  { %2304 = vmatpush3.bf16.msra.mxu0 %v2551_v50 }
  0x6b   :  { %2326 = vmatpush3.bf16.msra.mxu1 %v2553_v52  ;;  %2305 = vmatprep.subr.bf16.mxu0 %v2554_v53 }
  0x6c   :  { %2327 = vmatprep.subr.bf16.mxu1 %v2556_v55 }
  0x6e   :  { %2306 = vmatpush3.bf16.msra.mxu0 %v2555_v54 }
  0x6f   :  { %2328 = vmatpush3.bf16.msra.mxu1 %v2557_v56  ;;  %2307 = vmatprep.subr.bf16.mxu0 %v2558_v57 }
  0x70   :  { %2329 = vmatprep.subr.bf16.mxu1 %v2560_v59 }
  0x72   :  { %2308 = vmatpush3.bf16.msra.mxu0 %v2559_v58 }
  0x73   :  { %2330 = vmatpush3.bf16.msra.mxu1 %v2561_v60  ;;  %2309 = vmatprep.subr.bf16.mxu0 %v2562_v61 }
  0x74   :  { %2331 = vmatprep.subr.bf16.mxu1 %v2564_v63 }
  0x76   :  { %2310 = vmatpush3.bf16.msra.mxu0 %v2563_v62 }
  0x77   :  { %2332 = vmatpush3.bf16.msra.mxu1 %v2565_v0  ;;  %2311 = vmatprep.subr.bf16.mxu0 %v2566_v1 }
  0x78   :  { %2333 = vmatprep.subr.bf16.mxu1 %v2568_v3 }
  0x7a   :  { %2312 = vmatpush3.bf16.msra.mxu0 %v2567_v2 }
  0x7b   :  { %2334 = vmatpush3.bf16.msra.mxu1 %v2569_v4  ;;  %2313 = vmatprep.subr.bf16.mxu0 %v2570_v5 }
  0x7c   :  { %2335 = vmatprep.subr.bf16.mxu1 %v2572_v7 }
  0x7e   :  { %2314 = vmatpush3.bf16.msra.mxu0 %v2571_v6 }
  0x7f   :  { %2336 = vmatpush3.bf16.msra.mxu1 %v2573_v8  ;;  %2315 = vmatprep.subr.bf16.mxu0 %v2574_v9 }
  0x80   :  { %2337 = vmatprep.subr.bf16.mxu1 %v2576_v11 }
  0x82   :  { %2316 = vmatpush3.bf16.msra.mxu0 %v2575_v10 }
  0x83   :  { %2338 = vmatpush3.bf16.msra.mxu1 %v2580_v14  ;;  %2345 = vmatprep.subr.bf16.mxu0 %v2581_v15 }
  0x84   :  { %2382 = vmatprep.subr.bf16.mxu1 %v2634_v19 }
  0x85   :  { %1628 = vmatmul.mubr.bf16.vlgmr.msra.gmra.mrb[12].mxu0 %v2577_v12 }
  0x86   :  { %2346 = vmatpush3.bf16.msra.mxu0 %v2585_v18  ;;  %1669 = vmatmul.mubr.bf16.vlgmr.msra.gmra.mrb[12].mxu1 %v2582_v16 }
  0x87   :  { %2347 = vmatprep.subr.bf16.mxu0 %v2586_v20  ;;  %2394 = vmatprep.mubr.msk.bf16.mxu1 %vm2635_vm0, %v2634_v19 }
  0x88   :  { %2383 = vmatpush3.bf16.msra.mxu1 %v2590_v23  ;;  %1709 = vmatprep.mubr.bf16.mxu0 %v2607_v36 }
  0x89   :  { %2384 = vmatprep.subr.bf16.mxu1 %v2634_v19 }
  0x8a   :  { %2348 = vmatpush3.bf16.msra.mxu0 %v2587_v21 }
  0x8b   :  { %2349 = vmatprep.subr.bf16.mxu0 %v2588_v22 }
  0x8c   :  { %2385 = vmatpush3.bf16.msra.mxu1 %v2593_v26 }
  0x8d   :  { %2386 = vmatprep.subr.bf16.mxu1 %v2634_v19 }
  0x8e   :  { %2350 = vmatpush3.bf16.msra.mxu0 %v2589_v24 }
  0x8f   :  { %2351 = vmatprep.subr.bf16.mxu0 %v2591_v25 }
  0x90   :  { %2387 = vmatpush3.bf16.msra.mxu1 %v2596_v29 }
  0x91   :  { %2388 = vmatprep.subr.bf16.mxu1 %v2634_v19 }
  0x92   :  { %2352 = vmatpush3.bf16.msra.mxu0 %v2592_v27 }
  0x93   :  { %2353 = vmatprep.subr.bf16.mxu0 %v2594_v28 }
  0x94   :  { %2389 = vmatpush3.bf16.msra.mxu1 %v2599_v32 }
  0x95   :  { %2390 = vmatprep.subr.bf16.mxu1 %v2634_v19 }
  0x96   :  { %2354 = vmatpush3.bf16.msra.mxu0 %v2595_v30 }
  0x97   :  { %2355 = vmatprep.subr.bf16.mxu0 %v2597_v31 }
  0x98   :  { %2391 = vmatpush3.bf16.msra.mxu1 %v2602_v35 }
  0x9a   :  { %2356 = vmatpush3.bf16.msra.mxu0 %v2598_v33 }
  0x9b   :  { %2357 = vmatprep.subr.bf16.mxu0 %v2600_v34 }
  0x9c   :  { %14 = vsyncpa [#allocation4], 0  ;;  %2392 = vmatprep.subr.bf16.mxu1 %v2634_v19  ;;  %v2604_v40 = vld [vmem:[%s3238_s1 + $0x438] sm:$0xff]   ;;  %v2609_v41 = vld [vmem:[%s3237_s0 + $0x48] ss:$76 sps:$4 sm:$0xff]   ;;  %vm1345_vm1 = vcmask 785408  }
  0x9d   :  { %2393 = vmatpush3.bf16.msra.mxu1 %v2608_v39  ;;  %v2605_v42 = vld [vmem:[%s3237_s0 + $0x40] ss:$76 sps:$4 sm:$0xff]   ;;  %v1773_v58 = vld [vmem:[%s3240_s3 + $0x8] sm:$0x3]  ;;  %vm1788_vm2 = vcmask 1041408   ;;  %vm2636_vm3 = vmmov 1  }
  0x9e   :  { %2358 = vmatpush3.bf16.msra.mxu0 %v2601_v37  ;;  %v1772_v57 = vld [vmem:[%s3240_s3] sm:$0xff]  ;;  %vm3197_vm4 = vmpackc.low %vm1788_vm2, %vm2636_vm3  ;;  %vm1781_vm5 = vcmask 80896  }
  0x9f   :  { %2359 = vmatprep.subr.bf16.mxu0 %v2603_v38  ;;  %v2412_v59 = vpack.c.bf16 %v1773_v58, %v1772_v57  ;;  %v2160_v58 = vld [vmem:[%s3239_s2] ss:$0 sm:$0xff] }
  0xa0   :  { %2395 = vmatmul.mubr.msk.bf16.vlgmr.msra.gmra.mrb[16].mxu1 %vm1345_vm1, %v2609_v41 }
  0xa1   :  { %2414 = vmatprep.subr.msk.bf16.mxu1 %vm3197_vm4, %v2412_v59 }
  0xa2   :  { %2360 = vmatpush3.bf16.msra.mxu0 %v2604_v40  ;;  %2417 = vmatpush3.bf16.msk.msra.mxu1 %vm3197_vm4, %v2412_v59 }
  0xa5   :  { %1710 = vmatmul.mubr.bf16.vlgmr.msra.gmra.mrb[16].mxu0 %v2605_v42 }
  0xf8   :  { %v2185_v43 = vpop.f32.mrb[0].mxu0 }
  0xf9   :  { %v2207_v44 = vpop.f32.mrb[0].mxu1  ;;  %v2186_v45 = vpop.f32.mrb[1].mxu0 }
  0xfa   :  { %v2187_v46 = vadd.f32 %v2186_v45, %v2185_v43  ;;  %v2208_v47 = vpop.f32.mrb[1].mxu1  ;;  %v2188_v48 = vpop.f32.mrb[2].mxu0 }
  0xfb   :  { %v2209_v49 = vadd.f32 %v2208_v47, %v2207_v44  ;;  %v2210_v50 = vpop.f32.mrb[2].mxu1  ;;  %v2189_v51 = vpop.f32.mrb[3].mxu0 }
  0xfc   :  { %v2190_v52 = vadd.f32 %v2189_v51, %v2188_v48  ;;  %v2211_v53 = vpop.f32.mrb[3].mxu1 }
  0xfd   :  { %v1425_v54 = vadd.f32 %v2209_v49, %v2187_v46  ;;  %v2212_v55 = vadd.f32 %v2211_v53, %v2210_v50 }
  0xff   :  { %v1428_v56 = vadd.f32 %v2212_v55, %v2190_v52 }
 0x118   :  { %v2229_v61 = vpop.f32.mrb[4].mxu0 }
 0x119   :  { %v2230_v62 = vpop.f32.mrb[5].mxu0  ;;  %v2251_v3 = vpop.f32.mrb[4].mxu1 }
 0x11a   :  { %v2231_v63 = vadd.f32 %v2230_v62, %v2229_v61  ;;  %v2232_v0 = vpop.f32.mrb[6].mxu0  ;;  %v2252_v5 = vpop.f32.mrb[5].mxu1 }
 0x11b   :  { %v2233_v1 = vpop.f32.mrb[7].mxu0  ;;  %v2253_v7 = vadd.f32 %v2252_v5, %v2251_v3  ;;  %v2254_v8 = vpop.f32.mrb[6].mxu1  ;;  %v1869_v3 = vld [vmem:[%s3242_s5] sm:$0xff] }
 0x11c   :  { %v1466_v2 = vadd.f32 %v2231_v63, %v1425_v54  ;;  %v2234_v4 = vadd.f32 %v2233_v1, %v2232_v0  ;;  %v2255_v9 = vpop.f32.mrb[7].mxu1 }
 0x11d   :  { %v2256_v11 = vadd.f32 %v2255_v9, %v2254_v8 }
 0x11e   :  { %v1469_v6 = vadd.f32 %v2234_v4, %v1428_v56  ;;  %v1507_v10 = vadd.f32 %v2253_v7, %v1466_v2  ;;  %v1870_v4 = vld [vmem:[%s3242_s5 + $0x8] sm:$0x3] }
 0x11f   :  { %v2418_v5 = vpack.c.bf16 %v1870_v4, %v1869_v3 }
 0x120   :  { %v1510_v12 = vadd.f32 %v2256_v11, %v1469_v6  ;;  %v2161_v6 = vld [vmem:[%s3241_s4] ss:$0 sm:$0xff]  ;;  %s2638_s4 = smov [#allocation3]  }
 0x121   :  { %2420 = vmatprep.subr.msk.bf16.mxu1 %vm3197_vm4, %v2418_v5  ;;  %s1979_s5 = sshll.u32 %s2638_s4, 4  ;;  %s1980_s5 = int_to_ptr.vmem [resolvable:$true] %s1979_s5 }
 0x122   :  { %s2610_s12 = scalar_lea.vmem %s1980_s5, 256  ;;  %p2615_p1 = scmp.lt.s32.totalorder %s1980_s5, %s1980_s5 }
 0x123   :  { %p2611_p0 = scmp.ne.s32.totalorder %s1980_s5, %s2610_s12  ;;  %p2616_p2 = scmp.lt.s32.totalorder %s2610_s12, %s2610_s12 }
 0x125   :  { %p2617_p3 = por %p2616_p2, %p2615_p1 }
 0x127   :  { %p2618_p4 = pnand %p2617_p3, %p2611_p0 }
 0x138   :  { %v2273_v13 = vpop.f32.mrb[8].mxu0 }
 0x139   :  { %v2274_v14 = vpop.f32.mrb[9].mxu0  ;;  %v2295_v17 = vpop.f32.mrb[8].mxu1 }
 0x13a   :  { %v2275_v15 = vadd.f32 %v2274_v14, %v2273_v13  ;;  %v2276_v16 = vpop.f32.mrb[10].mxu0  ;;  %v2296_v21 = vpop.f32.mrb[9].mxu1  ;;  %v2637_v13 = vmov 0   ;;  %v2165_v14 = vld [vmem:[#allocation2] ss:$0 sm:$0xff] }
 0x13b   :  { %v2277_v18 = vpop.f32.mrb[11].mxu0  ;;  %v2297_v22 = vadd.f32 %v2296_v21, %v2295_v17  ;;  %v2298_v23 = vpop.f32.mrb[10].mxu1  ;;  %2431 = vset.pattern.permute.xlu0 %v2637_v13 }
 0x13c   :  { %v1548_v19 = vadd.f32 %v2275_v15, %v1507_v10  ;;  %v2278_v20 = vadd.f32 %v2277_v18, %v2276_v16  ;;  %v2299_v25 = vpop.f32.mrb[11].mxu1 }
 0x13d   :  { %v2300_v27 = vadd.f32 %v2299_v25, %v2298_v23 }
 0x13e   :  { %v1551_v24 = vadd.f32 %v2278_v20, %v1510_v12  ;;  %v1589_v26 = vadd.f32 %v2297_v22, %v1548_v19 }
 0x140   :  { %v1592_v28 = vadd.f32 %v2300_v27, %v1551_v24 }
 0x158   :  { %v2317_v29 = vpop.f32.mrb[12].mxu0 }
 0x159   :  { %v2318_v30 = vpop.f32.mrb[13].mxu0  ;;  %v2339_v33 = vpop.f32.mrb[12].mxu1 }
 0x15a   :  { %v2319_v31 = vadd.f32 %v2318_v30, %v2317_v29  ;;  %v2320_v32 = vpop.f32.mrb[14].mxu0  ;;  %v2340_v37 = vpop.f32.mrb[13].mxu1 }
 0x15b   :  { %v2321_v34 = vpop.f32.mrb[15].mxu0  ;;  %v2341_v38 = vadd.f32 %v2340_v37, %v2339_v33  ;;  %v2342_v39 = vpop.f32.mrb[14].mxu1 }
 0x15c   :  { %v1630_v35 = vadd.f32 %v2319_v31, %v1589_v26  ;;  %v2322_v36 = vadd.f32 %v2321_v34, %v2320_v32  ;;  %v2343_v41 = vpop.f32.mrb[15].mxu1 }
 0x15d   :  { %v2344_v43 = vadd.f32 %v2343_v41, %v2342_v39 }
 0x15e   :  { %v1633_v40 = vadd.f32 %v2322_v36, %v1592_v28  ;;  %v1671_v42 = vadd.f32 %v2341_v38, %v1630_v35 }
 0x160   :  { %v1674_v44 = vadd.f32 %v2344_v43, %v1633_v40 }
 0x173   :  { %v1752_v45 = vpop.f32.mrb[16].mxu1 }
 0x174   :  { %v2396_v46 = vpop.f32.mrb[17].mxu1 }
 0x175   :  { %v1755_v47 = vpop.f32.mrb[18].mxu1 }
 0x176   :  { %v2397_v49 = vpop.f32.mrb[19].mxu1 }
 0x178   :  { %v2361_v48 = vpop.f32.mrb[16].mxu0 }
 0x179   :  { %v2362_v50 = vpop.f32.mrb[17].mxu0 }
 0x17a   :  { %v2363_v51 = vadd.f32 %v2362_v50, %v2361_v48  ;;  %v2364_v52 = vpop.f32.mrb[18].mxu0 }
 0x17b   :  { %v2365_v53 = vpop.f32.mrb[19].mxu0 }
 0x17c   :  { %v1712_v54 = vadd.f32 %v2363_v51, %v1671_v42  ;;  %v2366_v55 = vadd.f32 %v2365_v53, %v2364_v52 }
 0x17e   :  { %v1753_v56 = vadd.f32 %v1752_v45, %v1712_v54  ;;  %v1715_v57 = vadd.f32 %v2366_v55, %v1674_v44 }
 0x180   :  { %v1759_v59 = vmul.f32 0.125, %v1753_v56  ;;  %v1756_v61 = vadd.f32 %v1755_v47, %v1715_v57 }
 0x182   :  { %v1768_v62 = vadd.f32 %v2160_v58, %v1759_v59  ;;  %v1760_v63 = vmul.f32 0.125, %v1756_v61 }
 0x184   :  { %v1770_v0 = vmax.f32 %v1768_v62, 0.0  ;;  %v1769_v1 = vadd.f32 %v2160_v58, %v1760_v63 }
 0x186   :  { %v1771_v2 = vmax.f32 %v1769_v1, 0.0  ;;  %2402 = vmatprep.mubr.msk.f32.mxu1 %vm1781_vm5, %v1770_v0 }
 0x188   :  { %2403 = vmatmul.mubr.msk.f32.vlgmr.msra.gmra.mrb[20].mxu1 %vm1781_vm5, %v1771_v2 }
 0x189   :  { %2423 = vmatpush3.bf16.msk.msra.mxu1 %vm3197_vm4, %v2418_v5 }
 0x25b   :  { %v2404_v7 = vpop.f32.mrb[20].mxu1 }
 0x25c   :  { %v1864_v8 = vadd.f32 %v2404_v7, %v2161_v6  ;;  %v1858_v9 = vpop.f32.mrb[21].mxu1 }
 0x25d   :  { %v1859_v10 = vadd.f32 %v2161_v6, %v1858_v9 }
 0x25e   :  { %v1868_v12 = vmax.f32 %v1864_v8, 0.0 }
 0x25f   :  { %v1867_v11 = vmax.f32 %v1859_v10, 0.0 }
 0x261   :  { %2409 = vmatprep.mubr.msk.f32.mxu1 %vm1781_vm5, %v1867_v11 }
 0x262   :  { %2410 = vmatmul.mubr.msk.f32.vlgmr.msra.gmra.mrb[22].mxu1 %vm1781_vm5, %v1868_v12 }
 0x335   :  { %v2411_v15 = vpop.f32.mrb[22].mxu1 }
 0x336   :  { %v1953_v60 = vpop.f32.mrb[23].mxu1  ;;  %v1959_v17 = vadd.f32 %v2411_v15, %v2165_v14 }
 0x337   :  { %v1954_v16 = vadd.f32 %v2165_v14, %v1953_v60 }
 0x339   :  { %1964 = vperm.xlu0 %2431, %v1954_v16  }
 0x33d   :  { %1969 = vperm.xlu0 %2431, %v1959_v17  }
 0x3b8   :  { %v1965_v18 = vpop.permute.xlu0 %1964 }
 0x3b9   :  { %1972 = vst [vmem:[#allocation3] sm:$0xff] %v1965_v18 }
 0x3bc   :  { %v1970_v19 = vpop.permute.xlu0 %1969 }
 0x3bd   :  { %1973 = vst [vmem:[#allocation3 + $0x8] sm:$0xff] %v1970_v19 }
 0x3be   :  { %2621 = shalt.err (!%p2618_p4)
}
 0x3bf   :  { %s2622_s15 = scalar_lea.hbm %s3244_s7, 256 }
 0x3c0   :  { %p2623_p5 = scmp.ne.s32.totalorder %s3244_s7, %s2622_s15  ;;  %p2626_p6 = scmp.lt.u32.totalorder %s2622_s15, %s3244_s7 }
 0x3c2   :  { %p2628_p7 = pnand %p2626_p6, %p2623_p5 }
 0x3c4   :  { %2631 = shalt.err (!%p2628_p7)
}
 0x3c5   :  { %s2639_s20 = smov 128   ;;  %s2640_s21 = smov 8  }
 0x3c6   :  { %1985 = dma.vmem_to_hbm [thread:$0]  %s1980_s5, 256, %s3244_s7, [#allocation4], %s2639_s20, %s2639_s20, %s2640_s21  }
 0x3c7   :  { %2632 = dma.done.wait [#allocation4], 256  }
 0x3c8   :  { %2633 = vsyncadd [#allocation4], 4294967040 }
 0x3c9   :  { %1989 = vsyncpa [#allocation4], 1 }

</bundles_post_ra>
